<compile_context>
chip_gen: v7x
topology: tpu7x:2x2x1
jax: 0.10.0
libtpu: 0.0.40
codegen_flags: <defaults>
</compile_context>

<pallas_src>
import jax
import jax.numpy as jnp
from jax.experimental import pallas as pl
from jax.experimental.pallas import tpu as pltpu

C_IN = 3
C_MID = 12
C_OUT = 32
THRESHOLD = 1.0  # snntorch Leaky default threshold


def _round_up(x, m):
    return ((x + m - 1) // m) * m


def snn_img_kernel(x_ref, w1_ref, thr1_ref, w2_ref, thr2_ref, w3_ref,
                   b3_ref, b3p1_ref, o_ref):
    # x_ref: (3, TP) channel-major pixel tile; o_ref: (32, TP) lane-dense output tile.
    x = x_ref[...]
    hi = jax.lax.Precision.HIGHEST  # exact f32: results feed hard thresholds

    # conv1 on the MXU: (12, 3) @ (3, TP). Bias folded into the per-channel threshold,
    # so LIF1 (mem0 = 0) spikes iff cur1 > 1 - b1.
    cur1 = jnp.dot(w1_ref[...], x, precision=hi, preferred_element_type=jnp.float32)
    spk1 = (cur1 > thr1_ref[...]).astype(jnp.float32)

    # conv2: (32, 12) @ (12, TP). Bias folded into thr2 = 1 - b2.
    cur2 = jnp.dot(w2_ref[...], spk1, precision=hi, preferred_element_type=jnp.float32)

    # conv3 (residual path): (32, 3) @ (3, TP); its bias is applied in the fused select below.
    cur3 = jnp.dot(w3_ref[...], x, precision=hi, preferred_element_type=jnp.float32)

    # LIF2 spike + conv3 bias + residual add fused into one select + add:
    #   out = conv3(x) + b3 + heaviside(cur2 + b2 - 1)
    #       = cur3 + where(cur2 > 1 - b2, b3 + 1, b3)
    o_ref[...] = cur3 + jnp.where(cur2 > thr2_ref[...], b3p1_ref[...], b3_ref[...])


def snn_img_forward(x_nchw, params, *, tile_p=16384):
    """x_nchw: (N, 3, H, W) float32 -> (1, N, 32, H, W) float32."""
    w1, b1, w2, b2, w3, b3 = params  # weights (Cout, Cin), biases (Cout,)
    N, C, H, W = x_nchw.shape
    assert C == C_IN
    HW = H * W

    # Bias folding: per-channel spike thresholds + conv3 bias columns for the fused select.
    thr1 = (THRESHOLD - b1)[:, None]          # (12, 1)
    thr2 = (THRESHOLD - b2)[:, None]          # (32, 1)
    b3c = b3[:, None]                         # (32, 1)
    b3p1 = b3c + 1.0                          # (32, 1)

    # Channel-major pixel slab: NCHW -> (N, 3, H*W) is a free reshape (no transpose).
    x_slab = x_nchw.reshape(N, C_IN, HW)

    # Pixel tile selection:
    #   * big tiles (default 16K pixels) to amortize per-grid-step overhead,
    #   * if N == 1, clamp so the pixel axis gives >= 2 parallel steps (v7x has 2 TCs),
    #   * if everything fits in one tile, use the exact extent (full-dim block, no alignment
    #     constraint); otherwise keep tp a multiple of 128 and let Pallas mask the ragged
    #     last block (no wrapper-side pad/slice => no extra HBM copies).
    tp = _round_up(tile_p, 128)
    if N == 1:
        tp = min(tp, _round_up(pl.cdiv(HW, 2), 128))
    if HW <= tp:
        tp = HW
    n_ptiles = pl.cdiv(HW, tp)
    grid = (N, n_ptiles)

    const = lambda shape: pl.BlockSpec(shape, lambda n, p: (0, 0))

    out_slab = pl.pallas_call(
        snn_img_kernel,
        out_shape=jax.ShapeDtypeStruct((N, C_OUT, HW), jnp.float32),
        grid_spec=pltpu.PrefetchScalarGridSpec(
            num_scalar_prefetch=0,
            grid=grid,
            in_specs=[
                pl.BlockSpec((None, C_IN, tp), lambda n, p: (n, 0, p)),  # x tile (3, TP)
                const((C_MID, C_IN)),    # w1
                const((C_MID, 1)),       # thr1 = 1 - b1
                const((C_OUT, C_MID)),   # w2
                const((C_OUT, 1)),       # thr2 = 1 - b2
                const((C_OUT, C_IN)),    # w3
                const((C_OUT, 1)),       # b3
                const((C_OUT, 1)),       # b3 + 1
            ],
            out_specs=pl.BlockSpec((None, C_OUT, tp), lambda n, p: (n, 0, p)),
        ),
        compiler_params=pltpu.CompilerParams(
            dimension_semantics=("parallel", "parallel"),
            vmem_limit_bytes=48 * 1024 * 1024),
    )(x_slab, w1, thr1, w2, thr2, w3, b3c, b3p1)

    # (N, 32, HW) -> NCHW -> (1, N, 32, H, W); free reshapes, no padding to strip.
    return out_slab.reshape(N, C_OUT, H, W)[None, ...]


def reference_forward(x_nchw, params):
    """Pure-JAX reference of the PyTorch forward (one step), exact f32 matmuls."""
    w1, b1, w2, b2, w3, b3 = params
    hi = jax.lax.Precision.HIGHEST
    N, C, H, W = x_nchw.shape
    x = x_nchw.reshape(N, C_IN, H * W)
    cur1 = jnp.einsum('oc,ncp->nop', w1, x, precision=hi) + b1[None, :, None]
    spk1 = (cur1 > THRESHOLD).astype(jnp.float32)
    cur2 = jnp.einsum('oc,ncp->nop', w2, spk1, precision=hi) + b2[None, :, None]
    spk2 = (cur2 > THRESHOLD).astype(jnp.float32)
    cur3 = jnp.einsum('oc,ncp->nop', w3, x, precision=hi) + b3[None, :, None]
    out = (cur3 + spk2).reshape(N, C_OUT, H, W)
    return out[None, ...]


def init_params(key):
    """Deterministic synthetic weights for the three 1x1 convs.

    Stored channel-major (Cout, Cin) like the PyTorch conv weight (squeezed 1x1 taps).
    Scaled so some LIF neurons actually cross the threshold.
    """
    k1, k2, k3, k4, k5, k6 = jax.random.split(key, 6)
    w1 = jax.random.normal(k1, (C_MID, C_IN), jnp.float32) * 1.0
    b1 = jax.random.normal(k2, (C_MID,), jnp.float32) * 0.1
    w2 = jax.random.normal(k3, (C_OUT, C_MID), jnp.float32) * 0.5
    b2 = jax.random.normal(k4, (C_OUT,), jnp.float32) * 0.1
    w3 = jax.random.normal(k5, (C_OUT, C_IN), jnp.float32) * 1.0
    b3 = jax.random.normal(k6, (C_OUT,), jnp.float32) * 0.1
    return (w1, b1, w2, b2, w3, b3)
    # TODO(synk): fc1 (Linear 2097152->512) and lif3 are defined in __init__ but never
    # used in the forward pass, so they are intentionally not materialized.


if __name__ == "__main__":
    key = jax.random.PRNGKey(0)
    kx, kp = jax.random.split(key)
    params = init_params(kp)

    # Small shapes consistent with the module: NCHW, 3 input channels.
    N, H, W = 2, 16, 16
    x = jax.random.normal(kx, (N, C_IN, H, W), jnp.float32)
    out = jax.block_until_ready(snn_img_forward(x, params))
    ref = reference_forward(x, params)
    assert out.shape == (1, N, C_OUT, H, W), out.shape
    assert jnp.allclose(out, ref, atol=1e-4, rtol=1e-4)

    # Non-lane-aligned pixel count, single full-extent block (no padding anywhere).
    x2 = jax.random.normal(jax.random.PRNGKey(1), (1, C_IN, 10, 10), jnp.float32)
    out2 = jax.block_until_ready(snn_img_forward(x2, params))
    ref2 = reference_forward(x2, params)
    assert out2.shape == (1, 1, C_OUT, 10, 10), out2.shape
    assert jnp.allclose(out2, ref2, atol=1e-4, rtol=1e-4)

    # Multi-tile case with a ragged last block (400 pixels, 256-pixel tiles) exercising the
    # masked boundary read/write path and the N==1 two-tile split.
    x3 = jax.random.normal(jax.random.PRNGKey(2), (1, C_IN, 20, 20), jnp.float32)
    out3 = jax.block_until_ready(snn_img_forward(x3, params, tile_p=256))
    ref3 = reference_forward(x3, params)
    assert out3.shape == (1, 1, C_OUT, 20, 20), out3.shape
    assert jnp.allclose(out3, ref3, atol=1e-4, rtol=1e-4)

    print("KERNEL_OK")
</pallas_src>

<mosaic_0001>
module attributes {stable_mosaic.version = 11 : i64} {
  func.func @snn_img_kernel(%arg0: i32, %arg1: i32, %arg2: memref<1x3x256xf32, #tpu.memory_space<vmem>>, %arg3: memref<12x3xf32, #tpu.memory_space<vmem>>, %arg4: memref<12x1xf32, #tpu.memory_space<vmem>>, %arg5: memref<32x12xf32, #tpu.memory_space<vmem>>, %arg6: memref<32x1xf32, #tpu.memory_space<vmem>>, %arg7: memref<32x3xf32, #tpu.memory_space<vmem>>, %arg8: memref<32x1xf32, #tpu.memory_space<vmem>>, %arg9: memref<32x1xf32, #tpu.memory_space<vmem>>, %arg10: memref<1x32x256xf32, #tpu.memory_space<vmem>>) attributes {dimension_semantics = [#tpu.dimension_semantics<parallel>, #tpu.dimension_semantics<parallel>], iteration_bounds = array<i64: 2, 1>, scalar_prefetch = 0 : i64, scratch_operands = 0 : i64, tpu.core_type = #tpu.core_type<tc>, window_params = [{transform_indices = @transform_0, window_bounds = array<i64: 1, 3, 256>}, {pipeline_mode = #tpu.pipeline_mode<synchronous>, transform_indices = @transform_1, window_bounds = array<i64: 12, 3>}, {pipeline_mode = #tpu.pipeline_mode<synchronous>, transform_indices = @transform_2, window_bounds = array<i64: 12, 1>}, {pipeline_mode = #tpu.pipeline_mode<synchronous>, transform_indices = @transform_3, window_bounds = array<i64: 32, 12>}, {pipeline_mode = #tpu.pipeline_mode<synchronous>, transform_indices = @transform_4, window_bounds = array<i64: 32, 1>}, {pipeline_mode = #tpu.pipeline_mode<synchronous>, transform_indices = @transform_5, window_bounds = array<i64: 32, 3>}, {pipeline_mode = #tpu.pipeline_mode<synchronous>, transform_indices = @transform_6, window_bounds = array<i64: 32, 1>}, {pipeline_mode = #tpu.pipeline_mode<synchronous>, transform_indices = @transform_7, window_bounds = array<i64: 32, 1>}, {transform_indices = @transform_8, window_bounds = array<i64: 1, 32, 256>}]} {
    %c0 = arith.constant 0 : index
    %c0_0 = arith.constant 0 : index
    %c0_1 = arith.constant 0 : index
    %0 = vector.load %arg2[%c0, %c0_0, %c0_1] : memref<1x3x256xf32, #tpu.memory_space<vmem>>, vector<1x3x256xf32>
    %1 = vector.shape_cast %0 : vector<1x3x256xf32> to vector<3x256xf32>
    %c0_2 = arith.constant 0 : index
    %c0_3 = arith.constant 0 : index
    %2 = vector.load %arg3[%c0_2, %c0_3] : memref<12x3xf32, #tpu.memory_space<vmem>>, vector<12x3xf32>
    %cst = arith.constant dense<0.000000e+00> : vector<12x256xf32>
    %3 = tpu.matmul %2, %1, %cst {dimension_numbers = #tpu.dot_dimension_numbers<[1], [0], [0], [1], [0, 0, 1, 1], [], []>, precision = #tpu.contract_precision<fp32>} : vector<12x3xf32>, vector<3x256xf32>, vector<12x256xf32> -> vector<12x256xf32>
    %c0_4 = arith.constant 0 : index
    %c0_5 = arith.constant 0 : index
    %4 = vector.load %arg4[%c0_4, %c0_5] : memref<12x1xf32, #tpu.memory_space<vmem>>, vector<12x1xf32>
    %5 = vector.broadcast %4 : vector<12x1xf32> to vector<12x256xf32>
    %6 = arith.cmpf ogt, %3, %5 : vector<12x256xf32>
    %7 = arith.extui %6 : vector<12x256xi1> to vector<12x256xi32>
    %8 = arith.sitofp %7 : vector<12x256xi32> to vector<12x256xf32>
    %c0_6 = arith.constant 0 : index
    %c0_7 = arith.constant 0 : index
    %9 = vector.load %arg5[%c0_6, %c0_7] : memref<32x12xf32, #tpu.memory_space<vmem>>, vector<32x12xf32>
    %cst_8 = arith.constant dense<0.000000e+00> : vector<32x256xf32>
    %10 = tpu.matmul %9, %8, %cst_8 {dimension_numbers = #tpu.dot_dimension_numbers<[1], [0], [0], [1], [0, 0, 1, 1], [], []>, precision = #tpu.contract_precision<fp32>} : vector<32x12xf32>, vector<12x256xf32>, vector<32x256xf32> -> vector<32x256xf32>
    %c0_9 = arith.constant 0 : index
    %c0_10 = arith.constant 0 : index
    %11 = vector.load %arg7[%c0_9, %c0_10] : memref<32x3xf32, #tpu.memory_space<vmem>>, vector<32x3xf32>
    %cst_11 = arith.constant dense<0.000000e+00> : vector<32x256xf32>
    %12 = tpu.matmul %11, %1, %cst_11 {dimension_numbers = #tpu.dot_dimension_numbers<[1], [0], [0], [1], [0, 0, 1, 1], [], []>, precision = #tpu.contract_precision<fp32>} : vector<32x3xf32>, vector<3x256xf32>, vector<32x256xf32> -> vector<32x256xf32>
    %c0_12 = arith.constant 0 : index
    %c0_13 = arith.constant 0 : index
    %13 = vector.load %arg6[%c0_12, %c0_13] : memref<32x1xf32, #tpu.memory_space<vmem>>, vector<32x1xf32>
    %14 = vector.broadcast %13 : vector<32x1xf32> to vector<32x256xf32>
    %15 = arith.cmpf ogt, %10, %14 : vector<32x256xf32>
    %c0_14 = arith.constant 0 : index
    %c0_15 = arith.constant 0 : index
    %16 = vector.load %arg9[%c0_14, %c0_15] : memref<32x1xf32, #tpu.memory_space<vmem>>, vector<32x1xf32>
    %c0_16 = arith.constant 0 : index
    %c0_17 = arith.constant 0 : index
    %17 = vector.load %arg8[%c0_16, %c0_17] : memref<32x1xf32, #tpu.memory_space<vmem>>, vector<32x1xf32>
    %18 = vector.shape_cast %16 : vector<32x1xf32> to vector<32x1xf32>
    %19 = vector.broadcast %18 : vector<32x1xf32> to vector<32x256xf32>
    %20 = vector.shape_cast %17 : vector<32x1xf32> to vector<32x1xf32>
    %21 = vector.broadcast %20 : vector<32x1xf32> to vector<32x256xf32>
    %22 = arith.select %15, %19, %21 : vector<32x256xi1>, vector<32x256xf32>
    %23 = arith.addf %12, %22 : vector<32x256xf32>
    %c0_18 = arith.constant 0 : index
    %c0_19 = arith.constant 0 : index
    %c0_20 = arith.constant 0 : index
    %24 = vector.load %arg10[%c0_18, %c0_19, %c0_20] : memref<1x32x256xf32, #tpu.memory_space<vmem>>, vector<1x32x256xf32>
    %25 = vector.shape_cast %24 : vector<1x32x256xf32> to vector<32x256xf32>
    %26 = vector.shape_cast %23 : vector<32x256xf32> to vector<1x32x256xf32>
    tpu.vector_store %arg10[%c0_18, %c0_19, %c0_20], %26 {strides = array<i32>} : memref<1x32x256xf32, #tpu.memory_space<vmem>>, vector<1x32x256xf32>,
    return
  }
  func.func @transform_0(%arg0: i32, %arg1: i32) -> (i32, i32, i32) {
    %c0_i32 = arith.constant 0 : i32
    %c0_i32_0 = arith.constant 0 : i32
    return %arg0, %c0_i32, %arg1 : i32, i32, i32
  }
  func.func @transform_1(%arg0: i32, %arg1: i32) -> (i32, i32) {
    %c0_i32 = arith.constant 0 : i32
    %c0_i32_0 = arith.constant 0 : i32
    %c0_i32_1 = arith.constant 0 : i32
    return %c0_i32, %c0_i32_0 : i32, i32
  }
  func.func @transform_2(%arg0: i32, %arg1: i32) -> (i32, i32) {
    %c0_i32 = arith.constant 0 : i32
    %c0_i32_0 = arith.constant 0 : i32
    %c0_i32_1 = arith.constant 0 : i32
    return %c0_i32, %c0_i32_0 : i32, i32
  }
  func.func @transform_3(%arg0: i32, %arg1: i32) -> (i32, i32) {
    %c0_i32 = arith.constant 0 : i32
    %c0_i32_0 = arith.constant 0 : i32
    %c0_i32_1 = arith.constant 0 : i32
    return %c0_i32, %c0_i32_0 : i32, i32
  }
  func.func @transform_4(%arg0: i32, %arg1: i32) -> (i32, i32) {
    %c0_i32 = arith.constant 0 : i32
    %c0_i32_0 = arith.constant 0 : i32
    %c0_i32_1 = arith.constant 0 : i32
    return %c0_i32, %c0_i32_0 : i32, i32
  }
  func.func @transform_5(%arg0: i32, %arg1: i32) -> (i32, i32) {
    %c0_i32 = arith.constant 0 : i32
    %c0_i32_0 = arith.constant 0 : i32
    %c0_i32_1 = arith.constant 0 : i32
    return %c0_i32, %c0_i32_0 : i32, i32
  }
  func.func @transform_6(%arg0: i32, %arg1: i32) -> (i32, i32) {
    %c0_i32 = arith.constant 0 : i32
    %c0_i32_0 = arith.constant 0 : i32
    %c0_i32_1 = arith.constant 0 : i32
    return %c0_i32, %c0_i32_0 : i32, i32
  }
  func.func @transform_7(%arg0: i32, %arg1: i32) -> (i32, i32) {
    %c0_i32 = arith.constant 0 : i32
    %c0_i32_0 = arith.constant 0 : i32
    %c0_i32_1 = arith.constant 0 : i32
    return %c0_i32, %c0_i32_0 : i32, i32
  }
  func.func @transform_8(%arg0: i32, %arg1: i32) -> (i32, i32, i32) {
    %c0_i32 = arith.constant 0 : i32
    %c0_i32_0 = arith.constant 0 : i32
    return %arg0, %c0_i32, %arg1 : i32, i32, i32
  }
}

</mosaic_0001>

<bundles_post_ra>
// kernel: tpu_custom_call.1
= control target key start
LH: loop header
LB: loop body
LE: loop exit
PB: predicated region body
PF: predicated region fallthrough
CT: control target
= control target key end

     0   :  { %13 = vsyncpa [#allocation3], 0  ;;  %s3201_s0 = inlined_call_operand.vmem [shape: f32[2,3,256], index: 0, kind: input, shape index: {}]   ;;  %s3202_s1 = inlined_call_operand.vmem [shape: f32[12,3], index: 1, kind: input, shape index: {}]   ;;  %s3203_s2 = inlined_call_operand.vmem [shape: f32[12,1], index: 2, kind: input, shape index: {}]   ;;  %s3204_s3 = inlined_call_operand.vmem [shape: f32[32,12], index: 3, kind: input, shape index: {}]   ;;  %s3205_s4 = inlined_call_operand.vmem [shape: f32[32,1], index: 4, kind: input, shape index: {}]   ;;  %s3206_s5 = inlined_call_operand.vmem [shape: f32[32,3], index: 5, kind: input, shape index: {}]   ;;  %s3207_s6 = inlined_call_operand.vmem [shape: f32[32,1], index: 6, kind: input, shape index: {}]   ;;  %s3208_s7 = inlined_call_operand.vmem [shape: f32[32,1], index: 7, kind: input, shape index: {}]   ;;  %s3209_s8 = inlined_call_operand.hbm [shape: f32[2,32,256], index: 8, kind: output, shape index: {}]  }
   0x1   :  { %15 = vsyncpa [#allocation3 + $0x1], 0  ;;  %s2734_s27 = smov 0   ;;  %s2736_s28 = smov 0  }
   0x2   :  { %s2738_s29 = smov 0   ;;  %s2740_s30 = smov 0  }
   0x3   :  { %s2742_s9 = smov 0   ;;  %s2744_s10 = smov 0  }
   0x4 LB: > { %s2371_s11 = sadd.s32 4294967295, %s2681_s10   ;;  %s2372_s12 = sadd.s32 4294967294, %s2681_s10   ;;  %s2681_s10 = sphi %s2744_s10, %s21_s10   ;;  %s2677_s9 = sphi %s2742_s9, %s3220_s9   ;;  %s2673_s30 = sphi %s2740_s30, %s3219_s30   ;;  %s2669_s29 = sphi %s2738_s29, %s3218_s29   ;;  %s2665_s28 = sphi %s2736_s28, %s3217_s28   ;;  %s2661_s27 = sphi %s2734_s27, %s3216_s27  }
   0x5   : > { %s33_s13 = sadd.s32 1, %s2677_s9  ;;  %s217_s14 = sadd.s32 1, %s2669_s29 }
   0x6   : > { %p35_p0 = scmp.ge.s32.totalorder %s33_s13, 2  ;;  %p227_p1 = scmp.ne.s32.totalorder %s2669_s29, %s2665_s28 }
   0x7   : > { %p228_p2 = scmp.eq.s32.totalorder %s2371_s11, 1  ;;  %p233_p3 = scmp.ne.s32.totalorder %s2665_s28, %s2661_s27 }
   0x8   : > { %s3222_s13 = smov (%p35_p0, %s33_s13), 0  ;;  %p234_p5 = scmp.eq.s32.totalorder %s2372_s12, 1 }
   0x9   : > { %p2774_p4 = por %p228_p2, %p227_p1  ;;  %s212_s16 = ssub.s32 %s2677_s9, %s3222_s13 }
   0xa   : > { %p2375_p6 = scmp.ge.s32.totalorder %s2681_s10, 1  ;;  %p215_p7 = scmp.eq.s32.totalorder %s212_s16, 0 }
   0xb   : > { %p2781_p8 = por %p234_p5, %p233_p3  ;;  %p286_p9 = scmp.lt.s32.totalorder %s2681_s10, 3 }
   0xc   : > { %s2787_s18 = scalar_select %p215_p7, %s2669_s29, %s217_s14  }
   0xd   : > { %p287_p10 = pnand %p2375_p6, %p286_p9 }
   0xe   : > { %p325_p11 = scmp.lt.s32.totalorder (!%p287_p10), %s2673_s30, 1  ;;  %v336_v0 = vld [vmem:[%s3202_s1] sm:$0xff] (!%p287_p10)  ;;  %vm340_vm0 = vcmask (!%p287_p10), 23552   ;;  %v2683_v1 = vmov (!%p287_p10), 0.0   ;;  %v337_v3 = vld [vmem:[%s3202_s1 + $0x8] sm:$0xf] (!%p287_p10) }
   0xf   : > { %290 = sbr.rel (%p287_p10) target bundleno = 641 (0x281), region = 52  ;;  %515 = vmatprep.mubr.f32.mxu0 (!%p287_p10), %v2683_v1  ;;  %v342_v2 = vsel (!%p287_p10), %vm340_vm0, %v336_v0, 0  ;;  %418 = vmatprep.mubr.f32.mxu1 (!%p287_p10), %v2683_v1  ;;  %v867_v4 = vld [vmem:[%s3203_s2 + $0x8] sm:$0xf] (!%p287_p10)  ;;  %v345_v6 = vsel (!%p287_p10), %vm340_vm0, %v337_v3, 0  ;;  %v2684_v7 = vmov (!%p287_p10), 0  }
  0x10   : > { %v2803_v5 = vand.u32 (!%p287_p10), 4294901760, %v342_v2  ;;  %2600 = vset.pattern.permute.xlu0 (!%p287_p10), %v2684_v7  ;;  %2601 = vset.pattern.permute.xlu1 (!%p287_p10), %v2684_v7  ;;  %vm347_vm1 = vcmask (!%p287_p10), 1042432   ;;  %v2807_v9 = vand.u32 (!%p287_p10), 4294901760, %v345_v6  ;;  %v866_v10 = vld [vmem:[%s3203_s2] sm:$0xff] (!%p287_p10)  ;;  %v1558_v19 = vld [vmem:[%s3205_s4 + $0x10] sm:$0xff] (!%p287_p10)  ;;  %v1553_v39 = vld [vmem:[%s3206_s5 + $0x8] sm:$0xff] (!%p287_p10) }
  0x11   : > { %875 = vperm.xlu0 (!%p287_p10), %2600, %v867_v4   ;;  %v1588_v27 = vld [vmem:[%s3208_s7] sm:$0xff] (!%p287_p10)  ;;  %v1590_v32 = vld [vmem:[%s3208_s7 + $0x10] sm:$0xff] (!%p287_p10)  ;;  %v1648_v41 = vsel (!%p287_p10), %vm340_vm0, %v1553_v39, 0  ;;  %v1555_v46 = vld [vmem:[%s3206_s5 + $0x18] sm:$0xff] (!%p287_p10)  ;;  %vm894_vm2 = vcmask (!%p287_p10), 97280   ;;  %vm907_vm5 = vcmask (!%p287_p10), 1043456  }
  0x12   : > { %v420_v8 = vsub.f32 (!%p287_p10), %v342_v2, %v2803_v5  ;;  %v431_v12 = vsub.f32 (!%p287_p10), %v345_v6, %v2807_v9  ;;  %v1592_v35 = vld [vmem:[%s3207_s6] sm:$0xff] (!%p287_p10)  ;;  %v1594_v36 = vld [vmem:[%s3207_s6 + $0x10] sm:$0xff] (!%p287_p10)  ;;  %v1734_v42 = vand.u32 (!%p287_p10), 4294901760, %v1648_v41  ;;  %v1654_v47 = vsel (!%p287_p10), %vm340_vm0, %v1555_v46, 0  ;;  %v891_v63 = vld [vmem:[%s3204_s3 + $0x8] sm:$0xff] (!%p287_p10)  ;;  %s321_s24 = sand.u32 (!%p287_p10), 1, %s2665_s28  }
  0x13   : > { %v1552_v37 = vld [vmem:[%s3206_s5] sm:$0xff] (!%p287_p10)  ;;  %v1554_v43 = vld [vmem:[%s3206_s5 + $0x10] sm:$0xff] (!%p287_p10)  ;;  %v1756_v48 = vand.u32 (!%p287_p10), 4294901760, %v1654_v47  ;;  %v899_v3 = vsel (!%p287_p10), %vm894_vm2, %v891_v63, 0  ;;  %v1557_v7 = vld [vmem:[%s3205_s4 + $0x8] sm:$0xff] (!%p287_p10)  ;;  %s2401_s11 = sshll.u32 (!%p287_p10), %s2673_s30, 10 }
  0x14   : > { %v421_v13 = vand.u32 (!%p287_p10), 4294901760, %v420_v8  ;;  %v432_v17 = vand.u32 (!%p287_p10), 4294901760, %v431_v12  ;;  %v1645_v38 = vsel (!%p287_p10), %vm340_vm0, %v1552_v37, 0  ;;  %v1651_v44 = vsel (!%p287_p10), %vm340_vm0, %v1554_v43, 0  ;;  %v890_v61 = vld [vmem:[%s3204_s3] sm:$0xff] (!%p287_p10)  ;;  %v1591_v46 = vld [vmem:[%s3208_s7 + $0x18] sm:$0xff] (!%p287_p10) }
  0x15   : > { %870 = vperm.xlu0 (!%p287_p10), %2600, %v866_v10   ;;  %v1723_v40 = vand.u32 (!%p287_p10), 4294901760, %v1645_v38  ;;  %v1745_v45 = vand.u32 (!%p287_p10), 4294901760, %v1651_v44  ;;  %v2901_v50 = vsub.f32 (!%p287_p10), %v1648_v41, %v1734_v42  ;;  %v2910_v52 = vsub.f32 (!%p287_p10), %v1654_v47, %v1756_v48  ;;  %v1556_v4 = vld [vmem:[%s3205_s4] sm:$0xff] (!%p287_p10)  ;;  %s2686_s21 = smov (!%p287_p10), [#allocation2]  }
  0x16   : > { %s326_s25 = scalar_select %p325_p11, %s2673_s30, 1  ;;  %v422_v18 = vsub.f32 %v420_v8, %v421_v13  ;;  %v433_v24 = vsub.f32 %v431_v12, %v432_v17  ;;  %v896_v62 = vsel %vm894_vm2, %v890_v61, 0  ;;  %1562 = vperm.xlu1 %2601, %v1556_v4   ;;  %v2685_v43 = vmov 1.0  }
  0x17   : > { %v2896_v49 = vsub.f32 %v1645_v38, %v1723_v40  ;;  %v2906_v51 = vsub.f32 %v1651_v44, %v1745_v45  ;;  %v1736_v54 = vand.u32 4294901760, %v2901_v50  ;;  %v1758_v56 = vand.u32 4294901760, %v2910_v52  ;;  %s3155_s30 = scalar_lea.sflag [#allocation3], %s321_s24  ;;  %s2607_s22 = sshll.u32 %s2686_s21, 4  ;;  %s2608_s22 = int_to_ptr.vmem [resolvable:$false] %s2607_s22 }
  0x18   : > { %s2400_s26 = sshll.u32 %s326_s25, 3  ;;  %v423_v23 = vand.u32 4294901760, %v422_v18  ;;  %v434_v30 = vand.u32 4294901760, %v433_v24  ;;  %v2947_v0 = vand.u32 4294901760, %v896_v62  ;;  %v1559_v18 = vld [vmem:[%s3205_s4 + $0x18] sm:$0xff]  ;;  %s2376_s25 = sshll.u32 %s321_s24, 6 }
  0x19   : > { %s332_s19 = scalar_lea.vmem %s3201_s0, %s2400_s26  ;;  %1572 = vperm.xlu0 %2600, %v1558_v19   ;;  %v1725_v53 = vand.u32 4294901760, %v2896_v49  ;;  %v1747_v55 = vand.u32 4294901760, %v2906_v51  ;;  %s3130_s26 = scalar_lea.vmem [#allocation2], %s2376_s25 }
  0x1a   : > { %v335_v11 = vld [vmem:[%s332_s19] sm:$0x77]  ;;  %v2957_v6 = vsub.f32 %v896_v62, %v2947_v0  ;;  %1567 = vperm.xlu1 %2601, %v1557_v7   ;;  %s2292_s12 = sshll.u32 %s3130_s26, 4  ;;  %s3146_s19 = scalar_lea.hbm %s3209_s8, %s2401_s11  ;;  %s3148_s12 = int_to_ptr.vmem [resolvable:$true] %s2292_s12 }
  0x1b   : > { %v339_v14 = vcombine.high %v335_v11, %v335_v11  ;;  %v348_v15 = vsel %vm347_vm1, %v335_v11, 0  ;;  %s2603_s20 = scalar_lea.vmem %s3148_s12, 1024  ;;  %s2609_s23 = scalar_lea.vmem %s2608_s22, 2048 }
  0x1c   : > { %v2816_v16 = vand.u32 4294901760, %v348_v15  ;;  %p2604_p12 = scmp.ne.s32.totalorder %s3148_s12, %s2603_s20  ;;  %p2610_p1 = scmp.lt.s32.totalorder %s3148_s12, %s2608_s22 }
  0x1d   : > { %v350_v20 = vsel %vm347_vm1, %v339_v14, 0  ;;  %1598 = vperm.xlu0 %2600, %v1588_v27   ;;  %p2611_p2 = scmp.lt.s32.totalorder %s2609_s23, %s2603_s20 }
  0x1e   : > { %v2821_v21 = vand.u32 4294901760, %v350_v20  ;;  %v2824_v22 = vsub.f32 %v348_v15, %v2816_v16  ;;  %v985_v15 = vand.u32 4294901760, %v2957_v6  ;;  %1577 = vperm.xlu1 %2601, %v1559_v18   ;;  %p2605_p13 = pnand %p2604_p12, %p2774_p4 }
  0x1f   : > { %p2612_p3 = por %p2611_p2, %p2610_p1 }
  0x20   : > { %v442_v25 = vsub.f32 %v350_v20, %v2821_v21  ;;  %v2828_v26 = vand.u32 4294901760, %v2824_v22  ;;  %353 = vmatprep.subr.mxu1 %v2821_v21  ;;  %p2606_p0 = pneg %p2605_p13 }
  0x21   : > { %355 = vmatpush1.msra.mxu1 %v2816_v16  ;;  %1608 = vperm.xlu0 %2600, %v1590_v32   ;;  %v1589_v32 = vld [vmem:[%s3208_s7 + $0x8] sm:$0xff] }
  0x22   : > { %v2835_v28 = vand.u32 4294901760, %v442_v25  ;;  %v450_v29 = vsub.f32 %v2824_v22, %v2828_v26  ;;  %424 = vmatmul.mubr.f32.vlgmr.msra.gmra.mrb[0].mxu1 %v423_v23  ;;  %1603 = vperm.xlu1 %2601, %v1589_v32   ;;  %p2613_p5 = pnand %p2612_p3, %p2606_p0 }
  0x23   : > { %429 = vmatprep.mubr.f32.mxu1 %v2683_v1 }
  0x24   : > { %v444_v31 = vsub.f32 %v442_v25, %v2835_v28  ;;  %v451_v33 = vand.u32 4294901760, %v450_v29 }
  0x25   : > { %1618 = vperm.xlu0 %2600, %v1592_v35  }
  0x26   : > { %v445_v34 = vand.u32 4294901760, %v444_v31  ;;  %435 = vmatmul.mubr.f32.gmra.mrb[2].mxu1 %v434_v30  ;;  %v986_v31 = vsub.f32 %v2957_v6, %v985_v15  ;;  %1613 = vperm.xlu1 %2601, %v1591_v46  }
  0x27   : > { %982 = vmatprep.mubr.f32.mxu1 %v2683_v1 }
  0x28   : > { %446 = vmatprep.subr.mxu0 %v445_v34 }
  0x29   : > { %452 = vmatpush1.msra.mxu0 %v451_v33  ;;  %1628 = vperm.xlu0 %2600, %v1594_v36  }
  0x2a   : > { %517 = vmatmul.mubr.f32.vlgmr.msra.gmra.mrb[0].mxu0 %v2803_v5  ;;  %532 = vmatprep.subr.mxu0 %v442_v25 }
  0x2b   : > { %522 = vmatprep.mubr.f32.mxu0 %v2683_v1  ;;  %535 = vmatpush1.msra.mxu0 %v2824_v22 }
  0x2c   : > { %616 = vmatprep.subr.mxu0 %v2821_v21 }
  0x2e   : > { %524 = vmatmul.mubr.f32.gmra.mrb[2].mxu0 %v2807_v9 }
  0x2f   : > { %598 = vmatprep.mubr.f32.mxu0 %v2683_v1 }
  0x32   : > { %601 = vmatmul.mubr.f32.vlgmr.msra.gmra.mrb[0].mxu0 %v420_v8  ;;  %v2962_v8 = vand.u32 4294901760, %v899_v3 }
  0x33   : > { %606 = vmatprep.mubr.f32.mxu0 %v2683_v1  ;;  %618 = vmatpush1.msra.mxu0 %v2816_v16 }
  0x34   : > { %703 = vmatprep.subr.mxu0 %v2835_v28  ;;  %v2973_v19 = vsub.f32 %v899_v3, %v2962_v8 }
  0x36   : > { %609 = vmatmul.mubr.f32.gmra.mrb[2].mxu0 %v431_v12 }
  0x37   : > { %681 = vmatprep.mubr.f32.mxu0 %v2683_v1 }
  0x3a   : > { %685 = vmatmul.mubr.f32.vlgmr.msra.gmra.mrb[0].mxu0 %v421_v13 }
  0x3b   : > { %690 = vmatprep.mubr.f32.mxu0 %v2683_v1  ;;  %707 = vmatpush1.msra.mxu0 %v2828_v26 }
  0x3c   : > { %786 = vmatprep.subr.mxu0 %v2821_v21 }
  0x3e   : > { %694 = vmatmul.mubr.f32.gmra.mrb[2].mxu0 %v432_v17  ;;  %v893_v17 = vld [vmem:[%s3204_s3 + $0x18] sm:$0xff] }
  0x3f   : > { %770 = vmatprep.mubr.f32.mxu0 %v2683_v1 }
  0x42   : > { %772 = vmatmul.mubr.f32.vlgmr.msra.gmra.mrb[0].mxu0 %v2803_v5 }
  0x43   : > { %777 = vmatprep.mubr.f32.mxu0 %v2683_v1  ;;  %788 = vmatpush1.msra.mxu0 %v2816_v16 }
  0x44   : > { %1772 = vmatprep.subr.mxu0 %v445_v34 }
  0x46   : > { %779 = vmatmul.mubr.f32.gmra.mrb[2].mxu0 %v2807_v9 }
  0x47   : > { %851 = vmatprep.mubr.f32.mxu0 %v2683_v1 }
  0x4a   : > { %853 = vmatmul.mubr.f32.vlgmr.msra.gmra.mrb[0].mxu0 %v2803_v5  ;;  %v892_v5 = vld [vmem:[%s3204_s3 + $0x10] sm:$0xff] }
  0x4b   : > { %858 = vmatprep.mubr.f32.mxu0 %v2683_v1  ;;  %1778 = vmatpush1.msra.mxu0 %v451_v33  ;;  %v902_v10 = vsel %vm894_vm2, %v892_v5, 0  ;;  %v996_v33 = vand.u32 4294901760, %v2973_v19 }
  0x4c   : > { %1872 = vmatprep.subr.mxu0 %v442_v25  ;;  %v2975_v20 = vand.u32 4294901760, %v902_v10 }
  0x4e   : > { %860 = vmatmul.mubr.f32.gmra.mrb[2].mxu0 %v2807_v9  ;;  %v2992_v34 = vsub.f32 %v902_v10, %v2975_v20  ;;  %v1593_v10 = vld [vmem:[%s3207_s6 + $0x8] sm:$0xff] }
  0x4f   : > { %1841 = vmatprep.mubr.f32.mxu0 %v2683_v1  ;;  %1623 = vperm.xlu1 %2601, %v1593_v10  }
  0x52   : > { %1843 = vmatmul.mubr.f32.vlgmr.msra.gmra.mrb[4].mxu0 %v1723_v40 }
  0x53   : > { %1848 = vmatprep.mubr.f32.mxu0 %v2683_v1  ;;  %1875 = vmatpush1.msra.mxu0 %v2824_v22 }
  0x54   : > { %1972 = vmatprep.subr.mxu0 %v2821_v21 }
  0x56   : > { %1850 = vmatmul.mubr.f32.gmra.mrb[6].mxu0 %v1734_v42 }
  0x57   : > { %1855 = vmatprep.mubr.f32.mxu0 %v2683_v1 }
  0x5a   : > { %1857 = vmatmul.mubr.f32.gmra.mrb[8].mxu0 %v1745_v45 }
  0x5b   : > { %1862 = vmatprep.mubr.f32.mxu0 %v2683_v1 }
  0x5e   : > { %1864 = vmatmul.mubr.f32.gmra.mrb[10].mxu0 %v1756_v48 }
  0x5f   : > { %1938 = vmatprep.mubr.f32.mxu0 %v2683_v1 }
  0x62   : > { %1941 = vmatmul.mubr.f32.vlgmr.msra.gmra.mrb[4].mxu0 %v2896_v49 }
  0x63   : > { %1946 = vmatprep.mubr.f32.mxu0 %v2683_v1  ;;  %1974 = vmatpush1.msra.mxu0 %v2816_v16 }
  0x64   : > { %2077 = vmatprep.subr.mxu0 %v2835_v28  ;;  %v905_v28 = vsel %vm894_vm2, %v893_v17, 0 }
  0x65   : > { %v2996_v37 = vand.u32 4294901760, %v905_v28 }
  0x66   : > { %1949 = vmatmul.mubr.f32.gmra.mrb[6].mxu0 %v2901_v50 }
  0x67   : > { %1954 = vmatprep.mubr.f32.mxu0 %v2683_v1  ;;  %v3029_v63 = vsub.f32 %v905_v28, %v2996_v37 }
  0x6a   : > { %1957 = vmatmul.mubr.f32.gmra.mrb[8].mxu0 %v2906_v51 }
  0x6b   : > { %1962 = vmatprep.mubr.f32.mxu0 %v2683_v1 }
  0x6e   : > { %1965 = vmatmul.mubr.f32.gmra.mrb[10].mxu0 %v2910_v52 }
  0x6f   : > { %2037 = vmatprep.mubr.f32.mxu0 %v2683_v1 }
  0x72   : > { %2041 = vmatmul.mubr.f32.vlgmr.msra.gmra.mrb[4].mxu0 %v1725_v53 }
  0x73   : > { %2046 = vmatprep.mubr.f32.mxu0 %v2683_v1  ;;  %2081 = vmatpush1.msra.mxu0 %v2828_v26 }
  0x74   : > { %2174 = vmatprep.subr.mxu0 %v2821_v21 }
  0x76   : > { %2050 = vmatmul.mubr.f32.gmra.mrb[6].mxu0 %v1736_v54 }
  0x77   : > { %2055 = vmatprep.mubr.f32.mxu0 %v2683_v1 }
  0x7a   : > { %2059 = vmatmul.mubr.f32.gmra.mrb[8].mxu0 %v1747_v55 }
  0x7b   : > { %2064 = vmatprep.mubr.f32.mxu0 %v2683_v1 }
  0x7e   : > { %2068 = vmatmul.mubr.f32.gmra.mrb[10].mxu0 %v1758_v56 }
  0x7f   : > { %2144 = vmatprep.mubr.f32.mxu0 %v2683_v1 }
  0x82   : > { %2146 = vmatmul.mubr.f32.vlgmr.msra.gmra.mrb[4].mxu0 %v1723_v40 }
  0x83   : > { %2151 = vmatprep.mubr.f32.mxu0 %v2683_v1  ;;  %2176 = vmatpush1.msra.mxu0 %v2816_v16 }
  0x86   : > { %2153 = vmatmul.mubr.f32.gmra.mrb[6].mxu0 %v1734_v42 }
  0x87   : > { %2158 = vmatprep.mubr.f32.mxu0 %v2683_v1 }
  0x8a   : > { %2160 = vmatmul.mubr.f32.gmra.mrb[8].mxu0 %v1745_v45 }
  0x8b   : > { %2165 = vmatprep.mubr.f32.mxu0 %v2683_v1 }
  0x8e   : > { %2167 = vmatmul.mubr.f32.gmra.mrb[10].mxu0 %v1756_v48 }
  0x8f   : > { %2239 = vmatprep.mubr.f32.mxu0 %v2683_v1 }
  0x90   : > { %v876_v2 = vpop.permute.xlu0 %875 }
  0x92   : > { %2241 = vmatmul.mubr.f32.vlgmr.msra.gmra.mrb[4].mxu0 %v1723_v40 }
  0x93   : > { %2246 = vmatprep.mubr.f32.mxu0 %v2683_v1 }
  0x94   : > { %v871_v13 = vpop.permute.xlu0 %870 }
  0x96   : > { %2248 = vmatmul.mubr.f32.gmra.mrb[6].mxu0 %v1734_v42 }
  0x97   : > { %2253 = vmatprep.mubr.f32.mxu0 %v2683_v1 }
  0x9a   : > { %2255 = vmatmul.mubr.f32.gmra.mrb[8].mxu0 %v1745_v45  ;;  %v987_v45 = vand.u32 4294901760, %v986_v31 }
  0x9b   : > { %2260 = vmatprep.mubr.f32.mxu0 %v2683_v1 }
  0x9e   : > { %2262 = vmatmul.mubr.f32.gmra.mrb[10].mxu0 %v1756_v48 }
  0xf5   : > { %v425_v57 = vpop.f32.mrb[0].mxu1 }
  0xf6   : > { %v427_v58 = vpop.f32.mrb[1].mxu1 }
  0xf9   : > { %v436_v59 = vpop.f32.mrb[2].mxu1 }
  0xfa   : > { %v438_v60 = vpop.f32.mrb[3].mxu1 }
 0x11d   : > { %v854_v9 = vpop.f32.mrb[0].mxu0 }
 0x11e   : > { %v2432_v11 = vadd.f32 %v854_v9, %v425_v57  ;;  %v856_v12 = vpop.f32.mrb[1].mxu0 }
 0x11f   : > { %v2433_v14 = vadd.f32 %v856_v12, %v427_v58  ;;  %v997_v58 = vsub.f32 %v2973_v19, %v996_v33 }
 0x120   : > { %vm878_vm3 = vcmp.gt.f32.partialorder %v2432_v11, %v871_v13 }
 0x121   : > { %v2379_v22 = vsel %vm878_vm3, 1.0, %v2683_v1  ;;  %vm879_vm4 = vcmp.gt.f32.partialorder %v2433_v14, %v871_v13  ;;  %v861_v23 = vpop.f32.mrb[2].mxu0  ;;  %vm3020_vm9 = vmpackc.low %vm907_vm5, %vm878_vm3  ;;  %v998_v11 = vand.u32 4294901760, %v997_v58 }
 0x122   : > { %v2979_v24 = vsub.f32 %v2379_v22, %v2379_v22  ;;  %v2380_v25 = vsel %vm879_vm4, 1.0, %v2683_v1  ;;  %v2434_v26 = vadd.f32 %v861_v23, %v436_v59  ;;  %v863_v27 = vpop.f32.mrb[3].mxu0  ;;  %vm3010_vm8 = vmpackc.low %vm907_vm5, %vm879_vm4  ;;  %v1007_v59 = vand.u32 4294901760, %v2992_v34 }
 0x123   : > { %v1028_v29 = vsub.f32 %v2380_v25, %v2380_v25  ;;  %v2435_v30 = vadd.f32 %v863_v27, %v438_v60  ;;  %v1018_v22 = vand.u32 4294901760, %v3029_v63  ;;  %v1595_v27 = vld [vmem:[%s3207_s6 + $0x18] sm:$0xff] }
 0x124   : > { %vm880_vm6 = vcmp.gt.f32.partialorder %v2434_v26, %v876_v2  ;;  %v1035_v35 = vand.u32 4294901760, %v2979_v24  ;;  %v1008_v18 = vsub.f32 %v2992_v34, %v1007_v59  ;;  %1633 = vperm.xlu1 %2601, %v1595_v27  }
 0x125   : > { %v2381_v36 = vsel %vm880_vm6, 1.0, %v2683_v1  ;;  %vm881_vm7 = vcmp.gt.f32.partialorder %v2435_v30, %v876_v2  ;;  %v1029_v38 = vand.u32 4294901760, %v1028_v29 }
 0x126   : > { %v909_v39 = vsel %vm907_vm5, %v2381_v36, 0  ;;  %v2382_v40 = vsel %vm881_vm7, 1.0, %v2683_v1  ;;  %v3006_v47 = vpack.c.bf16 %v2381_v36, %v2685_v43  ;;  %v1036_v61 = vsub.f32 %v2979_v24, %v1035_v35 }
 0x127   : > { %v1046_v41 = vsub.f32 %v909_v39, %v909_v39  ;;  %v912_v42 = vsel %vm907_vm5, %v2382_v40, 0  ;;  %v3001_v44 = vpack.c.bf16 %v2382_v40, %v2685_v43  ;;  %v1030_v3 = vsub.f32 %v1028_v29, %v1029_v38 }
 0x128   : > { %v1040_v48 = vsub.f32 %v912_v42, %v912_v42  ;;  %v1037_v14 = vand.u32 4294901760, %v1036_v61  ;;  %v1009_v28 = vand.u32 4294901760, %v1008_v18 }
 0x129   : > { %v1047_v62 = vand.u32 4294901760, %v1046_v41  ;;  %2404 = vmatprep.subr.msk.bf16.mxu1 %vm3010_vm8, %v3001_v44  ;;  %v2414_v2 = vpack.c.bf16 %v1046_v41, %v2979_v24  ;;  %v1031_v23 = vand.u32 4294901760, %v1030_v3 }
 0x12a   : > { %2407 = vmatpush1.bf16.msk.msra.mxu1 %vm3020_vm9, %v3006_v47  ;;  %v1041_v4 = vand.u32 4294901760, %v1040_v48  ;;  %v2412_v5 = vpack.c.bf16 %v1040_v48, %v1028_v29  ;;  %v1019_v29 = vsub.f32 %v3029_v63, %v1018_v22 }
 0x12b   : > { %v1048_v7 = vsub.f32 %v1046_v41, %v1047_v62  ;;  %v2424_v9 = vpack.c.bf16 %v1047_v62, %v1035_v35 }
 0x12c   : > { %v1042_v12 = vsub.f32 %v1040_v48, %v1041_v4  ;;  %v2422_v13 = vpack.c.bf16 %v1041_v4, %v1029_v38  ;;  %v1020_v30 = vand.u32 4294901760, %v1019_v29 }
 0x12d   : > { %988 = vmatmul.mubr.f32.vlgmr.msra.gmra.mrb[4].mxu1 %v987_v45  ;;  %v1049_v17 = vand.u32 4294901760, %v1048_v7 }
 0x12e   : > { %993 = vmatprep.mubr.f32.mxu1 %v2683_v1  ;;  %v1043_v24 = vand.u32 4294901760, %v1042_v12 }
 0x12f   : > { %v2410_v25 = vpack.c.bf16 %v1049_v17, %v1037_v14 }
 0x130   : > { %v2408_v26 = vpack.c.bf16 %v1043_v24, %v1031_v23 }
 0x131   : > { %999 = vmatmul.mubr.f32.gmra.mrb[6].mxu1 %v998_v11 }
 0x132   : > { %2409 = vmatprep.subr.bf16.mxu1 %v2408_v26  ;;  %1004 = vmatprep.mubr.f32.mxu1 %v2683_v1 }
 0x133   : > { %2411 = vmatpush1.bf16.msra.mxu1 %v2410_v25 }
 0x134   : > { %2413 = vmatprep.subr.bf16.mxu1 %v2412_v5 }
 0x135   : > { %1010 = vmatmul.mubr.f32.gmra.mrb[8].mxu1 %v1009_v28 }
 0x136   : > { %1015 = vmatprep.mubr.f32.mxu1 %v2683_v1 }
 0x139   : > { %1021 = vmatmul.mubr.f32.gmra.mrb[10].mxu1 %v1020_v30 }
 0x13a   : > { %1111 = vmatprep.mubr.f32.mxu1 %v2683_v1 }
 0x13d   : > { %1113 = vmatmul.mubr.f32.vlgmr.msra.gmra.mrb[4].mxu1 %v2947_v0 }
 0x13e   : > { %2415 = vmatpush1.bf16.msra.mxu1 %v2414_v2  ;;  %1118 = vmatprep.mubr.f32.mxu1 %v2683_v1 }
 0x13f   : > { %2418 = vmatprep.subr.msk.bf16.mxu1 %vm3010_vm8, %v3001_v44 }
 0x141   : > { %1120 = vmatmul.mubr.f32.gmra.mrb[6].mxu1 %v2962_v8 }
 0x142   : > { %1125 = vmatprep.mubr.f32.mxu1 %v2683_v1 }
 0x145   : > { %1127 = vmatmul.mubr.f32.gmra.mrb[8].mxu1 %v2975_v20 }
 0x146   : > { %1132 = vmatprep.mubr.f32.mxu1 %v2683_v1 }
 0x149   : > { %1134 = vmatmul.mubr.f32.gmra.mrb[10].mxu1 %v2996_v37 }
 0x14a   : > { %1212 = vmatprep.mubr.f32.mxu1 %v2683_v1 }
 0x14d   : > { %1215 = vmatmul.mubr.f32.vlgmr.msra.gmra.mrb[4].mxu1 %v2957_v6 }
 0x14e   : > { %2421 = vmatpush1.bf16.msk.msra.mxu1 %vm3020_vm9, %v3006_v47  ;;  %1220 = vmatprep.mubr.f32.mxu1 %v2683_v1 }
 0x14f   : > { %2423 = vmatprep.subr.bf16.mxu1 %v2422_v13 }
 0x151   : > { %1223 = vmatmul.mubr.f32.gmra.mrb[6].mxu1 %v2973_v19 }
 0x152   : > { %1228 = vmatprep.mubr.f32.mxu1 %v2683_v1 }
 0x155   : > { %1231 = vmatmul.mubr.f32.gmra.mrb[8].mxu1 %v2992_v34 }
 0x156   : > { %1236 = vmatprep.mubr.f32.mxu1 %v2683_v1 }
 0x159   : > { %1239 = vmatmul.mubr.f32.gmra.mrb[10].mxu1 %v3029_v63 }
 0x15a   : > { %1313 = vmatprep.mubr.f32.mxu1 %v2683_v1 }
 0x15d   : > { %1317 = vmatmul.mubr.f32.vlgmr.msra.gmra.mrb[4].mxu1 %v985_v15 }
 0x15e   : > { %2425 = vmatpush1.bf16.msra.mxu1 %v2424_v9  ;;  %1322 = vmatprep.mubr.f32.mxu1 %v2683_v1 }
 0x15f   : > { %2428 = vmatprep.subr.msk.bf16.mxu1 %vm3010_vm8, %v3001_v44 }
 0x161   : > { %1326 = vmatmul.mubr.f32.gmra.mrb[6].mxu1 %v996_v33  ;;  %v1563_v33 = vpop.permute.xlu1 %1562 }
 0x162   : > { %1331 = vmatprep.mubr.f32.mxu1 %v2683_v1 }
 0x165   : > { %1335 = vmatmul.mubr.f32.gmra.mrb[8].mxu1 %v1007_v59 }
 0x166   : > { %1340 = vmatprep.mubr.f32.mxu1 %v2683_v1 }
 0x169   : > { %1344 = vmatmul.mubr.f32.gmra.mrb[10].mxu1 %v1018_v22 }
 0x16a   : > { %1426 = vmatprep.mubr.f32.mxu1 %v2683_v1 }
 0x16d   : > { %1428 = vmatmul.mubr.f32.vlgmr.msra.gmra.mrb[4].mxu1 %v2947_v0 }
 0x16e   : > { %2431 = vmatpush1.bf16.msk.msra.mxu1 %vm3020_vm9, %v3006_v47  ;;  %1433 = vmatprep.mubr.f32.mxu1 %v2683_v1 }
 0x16f   : > { %1657 = vmatprep.subr.mxu1 %v2821_v21  ;;  %v1726_v21 = vsub.f32 %v2896_v49, %v1725_v53  ;;  %v1759_v53 = vsub.f32 %v2910_v52, %v1758_v56  ;;  %v1568_v52 = vpop.permute.xlu1 %1567  ;;  %v1573_v56 = vpop.permute.xlu0 %1572 }
 0x171   : > { %1435 = vmatmul.mubr.f32.gmra.mrb[6].mxu1 %v2962_v8  ;;  %v1727_v6 = vand.u32 4294901760, %v1726_v21 }
 0x172   : > { %1440 = vmatprep.mubr.f32.mxu1 %v2683_v1 }
 0x173   : > { %v3125_v35 = vpop.permute.xlu1 %1577  ;;  %v1599_v36 = vpop.permute.xlu0 %1598 }
 0x175   : > { %1442 = vmatmul.mubr.f32.gmra.mrb[8].mxu1 %v2975_v20 }
 0x176   : > { %1447 = vmatprep.mubr.f32.mxu1 %v2683_v1 }
 0x177   : > { %v1604_v39 = vpop.permute.xlu1 %1603  ;;  %v1609_v41 = vpop.permute.xlu0 %1608 }
 0x179   : > { %1449 = vmatmul.mubr.f32.gmra.mrb[10].mxu1 %v2996_v37 }
 0x17a   : > { %1523 = vmatprep.mubr.f32.mxu1 %v2683_v1 }
 0x17b   : > { %v1614_v44 = vpop.permute.xlu1 %1613  ;;  %v1619_v46 = vpop.permute.xlu0 %1618 }
 0x17d   : > { %1525 = vmatmul.mubr.f32.vlgmr.msra.gmra.mrb[4].mxu1 %v2947_v0  ;;  %v1737_v0 = vsub.f32 %v2901_v50, %v1736_v54  ;;  %v1760_v50 = vand.u32 4294901760, %v1759_v53  ;;  %v2242_v54 = vpop.f32.mrb[4].mxu0 }
 0x17e   : > { %1530 = vmatprep.mubr.f32.mxu1 %v2683_v1  ;;  %1659 = vmatpush1.msra.mxu1 %v2816_v16  ;;  %v2244_v15 = vpop.f32.mrb[5].mxu0 }
 0x17f   : > { %v1738_v16 = vand.u32 4294901760, %v1737_v0  ;;  %v2249_v19 = vpop.f32.mrb[6].mxu0  ;;  %v1624_v61 = vpop.permute.xlu1 %1623 }
 0x180   : > { %v1629_v10 = vpop.permute.xlu0 %1628 }
 0x181   : > { %1532 = vmatmul.mubr.f32.gmra.mrb[6].mxu1 %v2962_v8  ;;  %v1748_v8 = vsub.f32 %v2906_v51, %v1747_v55 }
 0x182   : > { %1537 = vmatprep.mubr.f32.mxu1 %v2683_v1 }
 0x183   : > { %v1749_v49 = vand.u32 4294901760, %v1748_v8 }
 0x185   : > { %1539 = vmatmul.mubr.f32.gmra.mrb[8].mxu1 %v2975_v20  ;;  %v2251_v20 = vpop.f32.mrb[7].mxu0 }
 0x186   : > { %1544 = vmatprep.mubr.f32.mxu1 %v2683_v1  ;;  %v2256_v51 = vpop.f32.mrb[8].mxu0 }
 0x187   : > { %v2258_v55 = vpop.f32.mrb[9].mxu0 }
 0x188   : > { %v3121_v31 = vpop.f32.mrb[10].mxu0 }
 0x189   : > { %1546 = vmatmul.mubr.f32.gmra.mrb[10].mxu1 %v2996_v37  ;;  %v3123_v32 = vpop.f32.mrb[11].mxu0 }
 0x18a   : > { %1722 = vmatprep.mubr.f32.mxu1 %v2683_v1 }
 0x18d   : > { %1728 = vmatmul.mubr.f32.vlgmr.msra.gmra.mrb[12].mxu1 %v1727_v6 }
 0x18e   : > { %1733 = vmatprep.mubr.f32.mxu1 %v2683_v1 }
 0x191   : > { %1739 = vmatmul.mubr.f32.gmra.mrb[14].mxu1 %v1738_v16 }
 0x192   : > { %1744 = vmatprep.mubr.f32.mxu1 %v2683_v1 }
 0x195   : > { %1750 = vmatmul.mubr.f32.gmra.mrb[16].mxu1 %v1749_v49 }
 0x196   : > { %1755 = vmatprep.mubr.f32.mxu1 %v2683_v1 }
 0x199   : > { %1761 = vmatmul.mubr.f32.gmra.mrb[18].mxu1 %v1760_v50 }
 0x1a3   : > { %v1634_v24 = vpop.permute.xlu1 %1633 }
 0x250   : > { %v1526_v34 = vpop.f32.mrb[4].mxu1 }
 0x251   : > { %v1528_v1 = vpop.f32.mrb[5].mxu1  ;;  %vm1580_vm10 = vcmp.gt.f32.partialorder %v1526_v34, %v1563_v33 }
 0x252   : > { %vm1581_vm11 = vcmp.gt.f32.partialorder %v1528_v1, %v1563_v33  ;;  %v1636_v47 = vsel %vm1580_vm10, %v1599_v36, %v1619_v46 }
 0x253   : > { %v1637_v58 = vsel %vm1581_vm11, %v1599_v36, %v1619_v46 }
 0x254   : > { %v1533_v37 = vpop.f32.mrb[6].mxu1 }
 0x255   : > { %v1535_v38 = vpop.f32.mrb[7].mxu1  ;;  %vm1582_vm12 = vcmp.gt.f32.partialorder %v1533_v37, %v1568_v52 }
 0x256   : > { %vm1583_vm13 = vcmp.gt.f32.partialorder %v1535_v38, %v1568_v52  ;;  %v1638_v2 = vsel %vm1582_vm12, %v1604_v39, %v1624_v61 }
 0x257   : > { %v1639_v5 = vsel %vm1583_vm13, %v1604_v39, %v1624_v61 }
 0x258   : > { %v1540_v40 = vpop.f32.mrb[8].mxu1 }
 0x259   : > { %v1542_v42 = vpop.f32.mrb[9].mxu1  ;;  %vm1584_vm14 = vcmp.gt.f32.partialorder %v1540_v40, %v1573_v56 }
 0x25a   : > { %vm1585_vm15 = vcmp.gt.f32.partialorder %v1542_v42, %v1573_v56  ;;  %v1640_v13 = vsel %vm1584_vm14, %v1609_v41, %v1629_v10 }
 0x25b   : > { %v1641_v18 = vsel %vm1585_vm15, %v1609_v41, %v1629_v10 }
 0x25c   : > { %v1547_v43 = vpop.f32.mrb[10].mxu1 }
 0x25d   : > { %v1549_v45 = vpop.f32.mrb[11].mxu1  ;;  %vm1586_vm0 = vcmp.gt.f32.partialorder %v1547_v43, %v3125_v35 }
 0x25e   : > { %vm1587_vm1 = vcmp.gt.f32.partialorder %v1549_v45, %v3125_v35  ;;  %v1642_v27 = vsel %vm1586_vm0, %v1614_v44, %v1634_v24 }
 0x25f   : > { %v1643_v30 = vsel %vm1587_vm1, %v1614_v44, %v1634_v24 }
 0x260   : > { %v1729_v48 = vpop.f32.mrb[12].mxu1 }
 0x261   : > { %v1730_v57 = vadd.f32 %v1729_v48, %v1636_v47  ;;  %v1731_v59 = vpop.f32.mrb[13].mxu1 }
 0x262   : > { %v1732_v60 = vadd.f32 %v1731_v59, %v1637_v58 }
 0x263   : > { %v2437_v62 = vadd.f32 %v2242_v54, %v1730_v57 }
 0x264   : > { %v2439_v63 = vadd.f32 %v2244_v15, %v1732_v60  ;;  %v1740_v3 = vpop.f32.mrb[14].mxu1 }
 0x265   : > { %2268 = vst [vmem:[%s3130_s26] sm:$0xff] %v2437_v62  ;;  %v1741_v4 = vadd.f32 %v1740_v3, %v1638_v2  ;;  %v1742_v7 = vpop.f32.mrb[15].mxu1 }
 0x266   : > { %2269 = vst [vmem:[%s3130_s26 + $0x8] sm:$0xff] %v2439_v63  ;;  %v1743_v9 = vadd.f32 %v1742_v7, %v1639_v5 }
 0x267   : > { %v2441_v11 = vadd.f32 %v2249_v19, %v1741_v4 }
 0x268   : > { %v2443_v12 = vadd.f32 %v2251_v20, %v1743_v9  ;;  %v1751_v14 = vpop.f32.mrb[16].mxu1 }
 0x269   : > { %2270 = vst [vmem:[%s3130_s26 + $0x10] sm:$0xff] %v2441_v11  ;;  %v1752_v17 = vadd.f32 %v1751_v14, %v1640_v13  ;;  %v1753_v22 = vpop.f32.mrb[17].mxu1 }
 0x26a   : > { %2271 = vst [vmem:[%s3130_s26 + $0x18] sm:$0xff] %v2443_v12  ;;  %v1754_v23 = vadd.f32 %v1753_v22, %v1641_v18 }
 0x26b   : > { %v2445_v25 = vadd.f32 %v2256_v51, %v1752_v17 }
 0x26c   : > { %v2447_v26 = vadd.f32 %v2258_v55, %v1754_v23  ;;  %v1762_v28 = vpop.f32.mrb[18].mxu1 }
 0x26d   : > { %2272 = vst [vmem:[%s3130_s26 + $0x20] sm:$0xff] %v2445_v25  ;;  %v1763_v29 = vadd.f32 %v1762_v28, %v1642_v27  ;;  %v1764_v21 = vpop.f32.mrb[19].mxu1 }
 0x26e   : > { %2273 = vst [vmem:[%s3130_s26 + $0x28] sm:$0xff] %v2447_v26  ;;  %v1765_v6 = vadd.f32 %v1764_v21, %v1643_v30 }
 0x26f   : > { %v2449_v0 = vadd.f32 %v3121_v31, %v1763_v29 }
 0x270   : > { %v2451_v16 = vadd.f32 %v3123_v32, %v1765_v6 }
 0x271   : > { %2274 = vst [vmem:[%s3130_s26 + $0x30] sm:$0xff] %v2449_v0 }
 0x272   : > { %2275 = vst [vmem:[%s3130_s26 + $0x38] sm:$0xff] %v2451_v16 }
 0x273   : > { %2616 = shalt.err (!%p2613_p5)
}
 0x274   : > { %s2617_s24 = scalar_lea.hbm %s3146_s19, 1024  ;;  %s2621_s11 = scalar_lea.hbm %s3209_s8, 2048 }
 0x275   : > { %p2618_p6 = scmp.ne.s32.totalorder %s3146_s19, %s2617_s24  ;;  %p2622_p10 = scmp.lt.u32.totalorder %s3146_s19, %s3209_s8 }
 0x276   : > { %p2623_p11 = scmp.lt.u32.totalorder %s2621_s11, %s2617_s24  ;;  %p2625_p13 = scmp.lt.u32.totalorder %s2617_s24, %s3146_s19 }
 0x277   : > { %p2619_p7 = pnand %p2618_p6, %p2774_p4 }
 0x278   : > { %p2624_p12 = por %p2623_p11, %p2622_p10 }
 0x279   : > { %p2620_p9 = pneg %p2619_p7 }
 0x27a   : > { %p2626_p0 = por %p2625_p13, %p2624_p12 }
 0x27c   : > { %p2627_p1 = pnand %p2626_p0, %p2620_p9 }
 0x27e   : > { %2630 = shalt.err (!%p2627_p1)
}
 0x27f   : > { %s2687_s20 = smov 256   ;;  %s2688_s21 = smov 16  }
 0x280   : > { %2540 = dma.vmem_to_hbm [thread:$0]  (%p2774_p4), %s3148_s12, 1024, %s3146_s19, %s3155_s30, %s2687_s20, %s2687_s20, %s2688_s21  }
 0x281 PF: > { %p2546_p2 = scmp.ge.s32.totalorder %s2681_s10, 2  ;;  %s2307_s22 = sand.u32 1, %s2661_s27  }
 0x282   : > { %s2308_s23 = scalar_lea.sflag [#allocation3], %s2307_s22 }
 0x283   : > { %p2543_p3 = pnand %p2546_p2, %p2781_p8 }
 0x285   : > { %2656 = dma.done.wait (!%p2543_p3), %s2308_s23, 1024  }
 0x286   : > { %2658 = vsyncadd (!%p2543_p3), %s2308_s23, 4294966272  ;;  %s21_s10 = sadd.s32 1, %s2681_s10   ;;  %s3216_s27 = smov %s2665_s28 }
 0x287   : > { %p18_p5 = scmp.ge.s32.totalorder %s21_s10, 4   ;;  %s3217_s28 = smov %s2669_s29 }
 0x288   : > { %s3218_s29 = smov %s2787_s18  ;;  %s3219_s30 = smov %s2677_s9 }
 0x289   : > { %s3220_s9 = smov %s3222_s13  ;;  %20 = sbr.rel (!%p18_p5) target bundleno = 4 (0x4), region = 87 }
 0x290   :  { %2313 = vsyncpa [#allocation3], 1 }
 0x291   :  { %2315 = vsyncpa [#allocation3 + $0x1], 1 }

</bundles_post_ra>
